<compile_context>
chip_gen: v7x
topology: tpu7x:2x2x1
jax: 0.10.0
libtpu: 0.0.40
codegen_flags: <defaults>
</compile_context>

<pallas_src>
import functools

import jax
import jax.numpy as jnp
from jax.experimental import pallas as pl
from jax.experimental.pallas import tpu as pltpu

NEG_INF = -1e30
LANE = 128


def _ceil_to(n, m):
    return ((n + m - 1) // m) * m


def _gat_attention(xh_bf, a_dst_col, a_src_row, mask_bias):
    """Masked attention softmax + aggregation for one GAT head.

    xh_bf:      [N, Fp] bf16 transformed (lane-padded) features
    a_dst_col:  [N, 1]  f32  target-node attention score
    a_src_row:  [1, N]  f32  source-node attention score
    mask_bias:  [N, N]  f32  0 on edges (incl. self-loops), -1e30 elsewhere
    """
    e = a_dst_col + a_src_row                    # [N, N] raw scores (broadcast add)
    e = jnp.maximum(e, 0.2 * e)                  # LeakyReLU(0.2), no cmp+select
    e = e + mask_bias                            # hoisted adjacency mask (additive)
    m = jnp.max(e, axis=-1, keepdims=True)       # finite: self-loop guarantees it
    p = jnp.exp(e - m)                           # masked entries underflow to 0
    denom = jnp.sum(p, axis=-1, keepdims=True)
    alpha = p * pl.reciprocal(denom, approx=True)    # EUP slot, not a VPU divide
    # TODO(synk): GATConv applies dropout to alpha in training mode; inference no-op.
    return jnp.dot(alpha.astype(jnp.bfloat16), xh_bf,
                   preferred_element_type=jnp.float32)   # [N, Fp]


def pose_rec_kernel(x_ref, mask_ref, pool_ref,
                    w1_ref, a1_ref, b1_ref,
                    w2_ref, a2_ref, b2_ref,
                    wc_ref, bc_ref, out_ref,
                    *, H1, FHp, H2, FOp, G):
    mask = mask_ref[...].astype(jnp.float32)     # [N, N], f32 softmax path
    x_bf = x_ref[...].astype(jnp.bfloat16)       # [N, F_in]

    # ---- GATConv 1 (heads concatenated) ----
    h1 = jnp.dot(x_bf, w1_ref[...], preferred_element_type=jnp.float32)   # [N, H1*FHp]
    h1_bf = h1.astype(jnp.bfloat16)
    # All-head src/dst attention scores in ONE matmul (no [N,F] transposes).
    s1 = jnp.dot(h1_bf, a1_ref[...], preferred_element_type=jnp.float32)  # [N, >=2*H1]
    s1_t = jnp.transpose(s1)                                              # tiny XLU transpose
    heads = []
    for h in range(H1):
        xh = h1_bf[:, h * FHp:(h + 1) * FHp]     # 128-lane aligned free view
        heads.append(_gat_attention(xh,
                                    s1[:, 2 * h + 1:2 * h + 2],   # a_dst col
                                    s1_t[2 * h:2 * h + 1, :],     # a_src row
                                    mask))
    x1 = jnp.concatenate(heads, axis=-1) + b1_ref[...]                    # [N, H1*FHp]
    x1 = jnp.maximum(x1, 0.0)                                             # ReLU

    # ---- GATConv 2 (heads averaged, concat=False) ----
    x1_bf = x1.astype(jnp.bfloat16)
    h2 = jnp.dot(x1_bf, w2_ref[...], preferred_element_type=jnp.float32)  # [N, H2*FOp]
    h2_bf = h2.astype(jnp.bfloat16)
    s2 = jnp.dot(h2_bf, a2_ref[...], preferred_element_type=jnp.float32)
    s2_t = jnp.transpose(s2)
    acc = jnp.zeros((x_ref.shape[0], FOp), jnp.float32)
    for h in range(H2):
        xh = h2_bf[:, h * FOp:(h + 1) * FOp]
        acc = acc + _gat_attention(xh,
                                   s2[:, 2 * h + 1:2 * h + 2],
                                   s2_t[2 * h:2 * h + 1, :],
                                   mask)
    x2 = acc * (1.0 / H2) + b2_ref[...]                                   # [N, FOp]

    # ---- global_max_pool + classifier fused: one matmul, one store ----
    # NOTE: a graph id with zero member nodes would pool to -1e30 (meaningless row).
    pool = pool_ref[...]                                                  # [N, G] additive bias
    pooled = jnp.concatenate(
        [jnp.max(x2 + pool[:, g:g + 1], axis=0, keepdims=True) for g in range(G)],
        axis=0)                                                           # [G, FOp]
    out_ref[...] = (jnp.dot(pooled, wc_ref[...], preferred_element_type=jnp.float32)
                    + bc_ref[...])


@functools.partial(jax.jit, static_argnames=("num_graphs",))
def pose_rec_forward(x, edge_index, batch, params, *, num_graphs):
    """Pure-JAX glue: densify graph + lane-pad weights, then one Pallas kernel."""
    # TODO(synk): for large N (v7x: 64 MiB VMEM), tile target-node rows over a
    # grid (mask BlockSpec (TILE_N, N), "parallel" row axis) instead of this
    # monolithic call; at these shapes everything fits comfortably in VMEM.
    N = x.shape[0]
    src, tgt = edge_index[0], edge_index[1]

    # Dense adjacency (adj[i, j] = 1 iff edge j -> i) + self loops, folded into
    # an additive softmax mask bias; bf16 halves its HBM/VMEM footprint.
    adj = jnp.zeros((N, N), jnp.float32).at[tgt, src].set(1.0)
    adj = jnp.maximum(adj, jnp.eye(N, dtype=jnp.float32))   # add_self_loops=True
    mask_bias = jnp.where(adj > 0, 0.0, NEG_INF).astype(jnp.bfloat16)

    # Graph-membership pooling bias (0 for member nodes, -1e30 otherwise).
    pool_bias = jnp.where(
        jax.nn.one_hot(batch, num_graphs, dtype=jnp.float32) > 0, 0.0, NEG_INF)

    w1, as1, ad1, b1 = params["w1"], params["as1"], params["ad1"], params["b1"]
    w2, as2, ad2, b2 = params["w2"], params["as2"], params["ad2"], params["b2"]
    wc, bc = params["wc"], params["bc"]

    H1, FH = as1.shape
    H2, FO = as2.shape
    F_in = w1.shape[0]
    C = wc.shape[1]
    FHp = _ceil_to(FH, LANE)
    FOp = _ceil_to(FO, LANE)
    S1C = _ceil_to(max(2 * H1, 8), 8)
    S2C = _ceil_to(max(2 * H2, 8), 8)

    # Lane-pad each head's feature block to 128 so per-head slices are free views,
    # and fuse all heads' att_src/att_dst vectors into one block matrix each.
    w1p = jnp.zeros((F_in, H1 * FHp), jnp.float32)
    b1p = jnp.zeros((1, H1 * FHp), jnp.float32)
    a1 = jnp.zeros((H1 * FHp, S1C), jnp.float32)
    for h in range(H1):
        w1p = w1p.at[:, h * FHp:h * FHp + FH].set(w1[:, h * FH:(h + 1) * FH])
        b1p = b1p.at[0, h * FHp:h * FHp + FH].set(b1[h * FH:(h + 1) * FH])
        a1 = a1.at[h * FHp:h * FHp + FH, 2 * h].set(as1[h])
        a1 = a1.at[h * FHp:h * FHp + FH, 2 * h + 1].set(ad1[h])

    w2p = jnp.zeros((H1 * FHp, H2 * FOp), jnp.float32)
    a2 = jnp.zeros((H2 * FOp, S2C), jnp.float32)
    for ho in range(H2):
        for hi in range(H1):
            w2p = w2p.at[hi * FHp:hi * FHp + FH, ho * FOp:ho * FOp + FO].set(
                w2[hi * FH:(hi + 1) * FH, ho * FO:(ho + 1) * FO])
        a2 = a2.at[ho * FOp:ho * FOp + FO, 2 * ho].set(as2[ho])
        a2 = a2.at[ho * FOp:ho * FOp + FO, 2 * ho + 1].set(ad2[ho])
    b2p = jnp.zeros((1, FOp), jnp.float32).at[0, :FO].set(b2)
    wcp = jnp.zeros((FOp, C), jnp.float32).at[:FO, :].set(wc)

    kernel = functools.partial(pose_rec_kernel, H1=H1, FHp=FHp, H2=H2, FOp=FOp,
                               G=num_graphs)
    n_inputs = 11
    return pl.pallas_call(
        kernel,
        out_shape=jax.ShapeDtypeStruct((num_graphs, C), jnp.float32),
        in_specs=[pl.BlockSpec(memory_space=pltpu.MemorySpace.VMEM)] * n_inputs,
        out_specs=pl.BlockSpec(memory_space=pltpu.MemorySpace.VMEM),
    )(x, mask_bias, pool_bias,
      w1p.astype(jnp.bfloat16), a1.astype(jnp.bfloat16), b1p,
      w2p.astype(jnp.bfloat16), a2.astype(jnp.bfloat16), b2p,
      wcp, bc.reshape(1, -1))


if __name__ == "__main__":
    # Model hyper-parameters (small, consistent with the module's __init__).
    in_features, hidden_features, out_features = 8, 16, 16
    num_classes, head_num_1, head_num_2 = 4, 2, 2
    # dropout is a no-op in inference.

    N_per_graph, num_graphs = 8, 2
    N = N_per_graph * num_graphs

    key = jax.random.PRNGKey(0)
    ks = jax.random.split(key, 12)
    params = {
        "w1": 0.1 * jax.random.normal(ks[0], (in_features, head_num_1 * hidden_features), jnp.float32),
        "as1": 0.1 * jax.random.normal(ks[1], (head_num_1, hidden_features), jnp.float32),
        "ad1": 0.1 * jax.random.normal(ks[2], (head_num_1, hidden_features), jnp.float32),
        "b1": 0.1 * jax.random.normal(ks[3], (head_num_1 * hidden_features,), jnp.float32),
        "w2": 0.1 * jax.random.normal(ks[4], (head_num_1 * hidden_features, head_num_2 * out_features), jnp.float32),
        "as2": 0.1 * jax.random.normal(ks[5], (head_num_2, out_features), jnp.float32),
        "ad2": 0.1 * jax.random.normal(ks[6], (head_num_2, out_features), jnp.float32),
        "b2": 0.1 * jax.random.normal(ks[7], (out_features,), jnp.float32),
        "wc": 0.1 * jax.random.normal(ks[8], (out_features, num_classes), jnp.float32),
        "bc": 0.1 * jax.random.normal(ks[9], (num_classes,), jnp.float32),
    }

    # Node features.
    x = jax.random.normal(ks[10], (N, in_features), jnp.float32)

    # Bidirectional chain edges within each graph (PyG convention: row0=src, row1=tgt).
    src_list, tgt_list = [], []
    for g in range(num_graphs):
        o = g * N_per_graph
        for i in range(N_per_graph - 1):
            src_list += [o + i, o + i + 1]
            tgt_list += [o + i + 1, o + i]
    edge_index = jnp.array([src_list, tgt_list], dtype=jnp.int32)
    batch = jnp.repeat(jnp.arange(num_graphs, dtype=jnp.int32), N_per_graph)

    out = pose_rec_forward(x, edge_index, batch, params, num_graphs=num_graphs)
    out = jax.block_until_ready(out)
    assert out.shape == (num_graphs, num_classes)
    assert bool(jnp.all(jnp.isfinite(out)))
    print("KERNEL_OK")
</pallas_src>

<mosaic_0001>
module attributes {stable_mosaic.version = 11 : i64} {
  func.func @pose_rec_kernel(%arg0: memref<16x8xf32, #tpu.memory_space<vmem>>, %arg1: memref<16x16xbf16, #tpu.memory_space<vmem>>, %arg2: memref<16x2xf32, #tpu.memory_space<vmem>>, %arg3: memref<8x256xbf16, #tpu.memory_space<vmem>>, %arg4: memref<256x8xbf16, #tpu.memory_space<vmem>>, %arg5: memref<1x256xf32, #tpu.memory_space<vmem>>, %arg6: memref<256x256xbf16, #tpu.memory_space<vmem>>, %arg7: memref<256x8xbf16, #tpu.memory_space<vmem>>, %arg8: memref<1x128xf32, #tpu.memory_space<vmem>>, %arg9: memref<128x4xf32, #tpu.memory_space<vmem>>, %arg10: memref<1x4xf32, #tpu.memory_space<vmem>>, %arg11: memref<2x4xf32, #tpu.memory_space<vmem>>) attributes {dimension_semantics = [], scalar_prefetch = 0 : i64, scratch_operands = 0 : i64, tpu.core_type = #tpu.core_type<tc>} {
    %c0 = arith.constant 0 : index
    %c0_0 = arith.constant 0 : index
    %0 = vector.load %arg1[%c0, %c0_0] : memref<16x16xbf16, #tpu.memory_space<vmem>>, vector<16x16xbf16>
    %1 = arith.extf %0 : vector<16x16xbf16> to vector<16x16xf32>
    %c0_1 = arith.constant 0 : index
    %c0_2 = arith.constant 0 : index
    %2 = vector.load %arg0[%c0_1, %c0_2] : memref<16x8xf32, #tpu.memory_space<vmem>>, vector<16x8xf32>
    %3 = arith.truncf %2 : vector<16x8xf32> to vector<16x8xbf16>
    %c0_3 = arith.constant 0 : index
    %c0_4 = arith.constant 0 : index
    %4 = vector.load %arg3[%c0_3, %c0_4] : memref<8x256xbf16, #tpu.memory_space<vmem>>, vector<8x256xbf16>
    %cst = arith.constant dense<0.000000e+00> : vector<16x256xf32>
    %5 = tpu.matmul %3, %4, %cst {dimension_numbers = #tpu.dot_dimension_numbers<[1], [0], [0], [1], [0, 0, 1, 1], [], []>} : vector<16x8xbf16>, vector<8x256xbf16>, vector<16x256xf32> -> vector<16x256xf32>
    %6 = arith.truncf %5 : vector<16x256xf32> to vector<16x256xbf16>
    %c0_5 = arith.constant 0 : index
    %c0_6 = arith.constant 0 : index
    %7 = vector.load %arg4[%c0_5, %c0_6] : memref<256x8xbf16, #tpu.memory_space<vmem>>, vector<256x8xbf16>
    %cst_7 = arith.constant dense<0.000000e+00> : vector<16x8xf32>
    %8 = tpu.matmul %6, %7, %cst_7 {dimension_numbers = #tpu.dot_dimension_numbers<[1], [0], [0], [1], [0, 0, 1, 1], [], []>} : vector<16x256xbf16>, vector<256x8xbf16>, vector<16x8xf32> -> vector<16x8xf32>
    %9 = tpu.transpose %8, [1, 0] : vector<16x8xf32> -> vector<8x16xf32>
    %10 = vector.extract_strided_slice %6 {offsets = [0, 0], sizes = [16, 128], strides = [1, 1]} : vector<16x256xbf16> to vector<16x128xbf16>
    %11 = vector.extract_strided_slice %8 {offsets = [0, 1], sizes = [16, 1], strides = [1, 1]} : vector<16x8xf32> to vector<16x1xf32>
    %12 = vector.extract_strided_slice %9 {offsets = [0, 0], sizes = [1, 16], strides = [1, 1]} : vector<8x16xf32> to vector<1x16xf32>
    %13 = vector.broadcast %11 : vector<16x1xf32> to vector<16x16xf32>
    %14 = vector.broadcast %12 : vector<1x16xf32> to vector<16x16xf32>
    %15 = arith.addf %13, %14 : vector<16x16xf32>
    %cst_8 = arith.constant 2.000000e-01 : f32
    %16 = vector.broadcast %cst_8 : f32 to vector<16x16xf32>
    %17 = arith.mulf %16, %15 : vector<16x16xf32>
    %18 = arith.maximumf %15, %17 : vector<16x16xf32>
    %19 = arith.addf %18, %1 : vector<16x16xf32>
    %cst_9 = arith.constant dense<0xFF800000> : vector<16xf32>
    %20 = vector.multi_reduction <maximumf>, %19, %cst_9 [1] : vector<16x16xf32> to vector<16xf32>
    %21 = vector.shape_cast %20 : vector<16xf32> to vector<16x1xf32>
    %22 = vector.broadcast %21 : vector<16x1xf32> to vector<16x16xf32>
    %23 = arith.subf %19, %22 : vector<16x16xf32>
    %24 = math.exp %23 : vector<16x16xf32>
    %cst_10 = arith.constant dense<0.000000e+00> : vector<16xf32>
    %25 = vector.multi_reduction <add>, %24, %cst_10 [1] : vector<16x16xf32> to vector<16xf32>
    %26 = vector.shape_cast %25 : vector<16xf32> to vector<16x1xf32>
    %27 = tpu.reciprocal %26 {approx = true} : vector<16x1xf32> -> vector<16x1xf32>
    %28 = vector.broadcast %27 : vector<16x1xf32> to vector<16x16xf32>
    %29 = arith.mulf %24, %28 : vector<16x16xf32>
    %30 = arith.truncf %29 : vector<16x16xf32> to vector<16x16xbf16>
    %cst_11 = arith.constant dense<0.000000e+00> : vector<16x128xf32>
    %31 = tpu.matmul %30, %10, %cst_11 {dimension_numbers = #tpu.dot_dimension_numbers<[1], [0], [0], [1], [0, 0, 1, 1], [], []>} : vector<16x16xbf16>, vector<16x128xbf16>, vector<16x128xf32> -> vector<16x128xf32>
    %32 = vector.extract_strided_slice %6 {offsets = [0, 128], sizes = [16, 128], strides = [1, 1]} : vector<16x256xbf16> to vector<16x128xbf16>
    %33 = vector.extract_strided_slice %8 {offsets = [0, 3], sizes = [16, 1], strides = [1, 1]} : vector<16x8xf32> to vector<16x1xf32>
    %34 = vector.extract_strided_slice %9 {offsets = [2, 0], sizes = [1, 16], strides = [1, 1]} : vector<8x16xf32> to vector<1x16xf32>
    %35 = vector.broadcast %33 : vector<16x1xf32> to vector<16x16xf32>
    %36 = vector.broadcast %34 : vector<1x16xf32> to vector<16x16xf32>
    %37 = arith.addf %35, %36 : vector<16x16xf32>
    %cst_12 = arith.constant 2.000000e-01 : f32
    %38 = vector.broadcast %cst_12 : f32 to vector<16x16xf32>
    %39 = arith.mulf %38, %37 : vector<16x16xf32>
    %40 = arith.maximumf %37, %39 : vector<16x16xf32>
    %41 = arith.addf %40, %1 : vector<16x16xf32>
    %cst_13 = arith.constant dense<0xFF800000> : vector<16xf32>
    %42 = vector.multi_reduction <maximumf>, %41, %cst_13 [1] : vector<16x16xf32> to vector<16xf32>
    %43 = vector.shape_cast %42 : vector<16xf32> to vector<16x1xf32>
    %44 = vector.broadcast %43 : vector<16x1xf32> to vector<16x16xf32>
    %45 = arith.subf %41, %44 : vector<16x16xf32>
    %46 = math.exp %45 : vector<16x16xf32>
    %cst_14 = arith.constant dense<0.000000e+00> : vector<16xf32>
    %47 = vector.multi_reduction <add>, %46, %cst_14 [1] : vector<16x16xf32> to vector<16xf32>
    %48 = vector.shape_cast %47 : vector<16xf32> to vector<16x1xf32>
    %49 = tpu.reciprocal %48 {approx = true} : vector<16x1xf32> -> vector<16x1xf32>
    %50 = vector.broadcast %49 : vector<16x1xf32> to vector<16x16xf32>
    %51 = arith.mulf %46, %50 : vector<16x16xf32>
    %52 = arith.truncf %51 : vector<16x16xf32> to vector<16x16xbf16>
    %cst_15 = arith.constant dense<0.000000e+00> : vector<16x128xf32>
    %53 = tpu.matmul %52, %32, %cst_15 {dimension_numbers = #tpu.dot_dimension_numbers<[1], [0], [0], [1], [0, 0, 1, 1], [], []>} : vector<16x16xbf16>, vector<16x128xbf16>, vector<16x128xf32> -> vector<16x128xf32>
    %54 = tpu.concatenate %31, %53 in 1 : vector<16x128xf32>, vector<16x128xf32> -> vector<16x256xf32>
    %c0_16 = arith.constant 0 : index
    %c0_17 = arith.constant 0 : index
    %55 = vector.load %arg5[%c0_16, %c0_17] : memref<1x256xf32, #tpu.memory_space<vmem>>, vector<1x256xf32>
    %56 = vector.broadcast %55 : vector<1x256xf32> to vector<16x256xf32>
    %57 = arith.addf %54, %56 : vector<16x256xf32>
    %cst_18 = arith.constant 0.000000e+00 : f32
    %58 = vector.broadcast %cst_18 : f32 to vector<16x256xf32>
    %59 = arith.maximumf %57, %58 : vector<16x256xf32>
    %60 = arith.truncf %59 : vector<16x256xf32> to vector<16x256xbf16>
    %c0_19 = arith.constant 0 : index
    %c0_20 = arith.constant 0 : index
    %61 = vector.load %arg6[%c0_19, %c0_20] : memref<256x256xbf16, #tpu.memory_space<vmem>>, vector<256x256xbf16>
    %cst_21 = arith.constant dense<0.000000e+00> : vector<16x256xf32>
    %62 = tpu.matmul %60, %61, %cst_21 {dimension_numbers = #tpu.dot_dimension_numbers<[1], [0], [0], [1], [0, 0, 1, 1], [], []>} : vector<16x256xbf16>, vector<256x256xbf16>, vector<16x256xf32> -> vector<16x256xf32>
    %63 = arith.truncf %62 : vector<16x256xf32> to vector<16x256xbf16>
    %c0_22 = arith.constant 0 : index
    %c0_23 = arith.constant 0 : index
    %64 = vector.load %arg7[%c0_22, %c0_23] : memref<256x8xbf16, #tpu.memory_space<vmem>>, vector<256x8xbf16>
    %cst_24 = arith.constant dense<0.000000e+00> : vector<16x8xf32>
    %65 = tpu.matmul %63, %64, %cst_24 {dimension_numbers = #tpu.dot_dimension_numbers<[1], [0], [0], [1], [0, 0, 1, 1], [], []>} : vector<16x256xbf16>, vector<256x8xbf16>, vector<16x8xf32> -> vector<16x8xf32>
    %66 = tpu.transpose %65, [1, 0] : vector<16x8xf32> -> vector<8x16xf32>
    %cst_25 = arith.constant 0.000000e+00 : f32
    %67 = vector.broadcast %cst_25 : f32 to vector<16x128xf32>
    %68 = vector.extract_strided_slice %63 {offsets = [0, 0], sizes = [16, 128], strides = [1, 1]} : vector<16x256xbf16> to vector<16x128xbf16>
    %69 = vector.extract_strided_slice %65 {offsets = [0, 1], sizes = [16, 1], strides = [1, 1]} : vector<16x8xf32> to vector<16x1xf32>
    %70 = vector.extract_strided_slice %66 {offsets = [0, 0], sizes = [1, 16], strides = [1, 1]} : vector<8x16xf32> to vector<1x16xf32>
    %71 = vector.broadcast %69 : vector<16x1xf32> to vector<16x16xf32>
    %72 = vector.broadcast %70 : vector<1x16xf32> to vector<16x16xf32>
    %73 = arith.addf %71, %72 : vector<16x16xf32>
    %cst_26 = arith.constant 2.000000e-01 : f32
    %74 = vector.broadcast %cst_26 : f32 to vector<16x16xf32>
    %75 = arith.mulf %74, %73 : vector<16x16xf32>
    %76 = arith.maximumf %73, %75 : vector<16x16xf32>
    %77 = arith.addf %76, %1 : vector<16x16xf32>
    %cst_27 = arith.constant dense<0xFF800000> : vector<16xf32>
    %78 = vector.multi_reduction <maximumf>, %77, %cst_27 [1] : vector<16x16xf32> to vector<16xf32>
    %79 = vector.shape_cast %78 : vector<16xf32> to vector<16x1xf32>
    %80 = vector.broadcast %79 : vector<16x1xf32> to vector<16x16xf32>
    %81 = arith.subf %77, %80 : vector<16x16xf32>
    %82 = math.exp %81 : vector<16x16xf32>
    %cst_28 = arith.constant dense<0.000000e+00> : vector<16xf32>
    %83 = vector.multi_reduction <add>, %82, %cst_28 [1] : vector<16x16xf32> to vector<16xf32>
    %84 = vector.shape_cast %83 : vector<16xf32> to vector<16x1xf32>
    %85 = tpu.reciprocal %84 {approx = true} : vector<16x1xf32> -> vector<16x1xf32>
    %86 = vector.broadcast %85 : vector<16x1xf32> to vector<16x16xf32>
    %87 = arith.mulf %82, %86 : vector<16x16xf32>
    %88 = arith.truncf %87 : vector<16x16xf32> to vector<16x16xbf16>
    %cst_29 = arith.constant dense<0.000000e+00> : vector<16x128xf32>
    %89 = tpu.matmul %88, %68, %cst_29 {dimension_numbers = #tpu.dot_dimension_numbers<[1], [0], [0], [1], [0, 0, 1, 1], [], []>} : vector<16x16xbf16>, vector<16x128xbf16>, vector<16x128xf32> -> vector<16x128xf32>
    %90 = arith.addf %67, %89 : vector<16x128xf32>
    %91 = vector.extract_strided_slice %63 {offsets = [0, 128], sizes = [16, 128], strides = [1, 1]} : vector<16x256xbf16> to vector<16x128xbf16>
    %92 = vector.extract_strided_slice %65 {offsets = [0, 3], sizes = [16, 1], strides = [1, 1]} : vector<16x8xf32> to vector<16x1xf32>
    %93 = vector.extract_strided_slice %66 {offsets = [2, 0], sizes = [1, 16], strides = [1, 1]} : vector<8x16xf32> to vector<1x16xf32>
    %94 = vector.broadcast %92 : vector<16x1xf32> to vector<16x16xf32>
    %95 = vector.broadcast %93 : vector<1x16xf32> to vector<16x16xf32>
    %96 = arith.addf %94, %95 : vector<16x16xf32>
    %cst_30 = arith.constant 2.000000e-01 : f32
    %97 = vector.broadcast %cst_30 : f32 to vector<16x16xf32>
    %98 = arith.mulf %97, %96 : vector<16x16xf32>
    %99 = arith.maximumf %96, %98 : vector<16x16xf32>
    %100 = arith.addf %99, %1 : vector<16x16xf32>
    %cst_31 = arith.constant dense<0xFF800000> : vector<16xf32>
    %101 = vector.multi_reduction <maximumf>, %100, %cst_31 [1] : vector<16x16xf32> to vector<16xf32>
    %102 = vector.shape_cast %101 : vector<16xf32> to vector<16x1xf32>
    %103 = vector.broadcast %102 : vector<16x1xf32> to vector<16x16xf32>
    %104 = arith.subf %100, %103 : vector<16x16xf32>
    %105 = math.exp %104 : vector<16x16xf32>
    %cst_32 = arith.constant dense<0.000000e+00> : vector<16xf32>
    %106 = vector.multi_reduction <add>, %105, %cst_32 [1] : vector<16x16xf32> to vector<16xf32>
    %107 = vector.shape_cast %106 : vector<16xf32> to vector<16x1xf32>
    %108 = tpu.reciprocal %107 {approx = true} : vector<16x1xf32> -> vector<16x1xf32>
    %109 = vector.broadcast %108 : vector<16x1xf32> to vector<16x16xf32>
    %110 = arith.mulf %105, %109 : vector<16x16xf32>
    %111 = arith.truncf %110 : vector<16x16xf32> to vector<16x16xbf16>
    %cst_33 = arith.constant dense<0.000000e+00> : vector<16x128xf32>
    %112 = tpu.matmul %111, %91, %cst_33 {dimension_numbers = #tpu.dot_dimension_numbers<[1], [0], [0], [1], [0, 0, 1, 1], [], []>} : vector<16x16xbf16>, vector<16x128xbf16>, vector<16x128xf32> -> vector<16x128xf32>
    %113 = arith.addf %90, %112 : vector<16x128xf32>
    %cst_34 = arith.constant 5.000000e-01 : f32
    %114 = vector.broadcast %cst_34 : f32 to vector<16x128xf32>
    %115 = arith.mulf %113, %114 : vector<16x128xf32>
    %c0_35 = arith.constant 0 : index
    %c0_36 = arith.constant 0 : index
    %116 = vector.load %arg8[%c0_35, %c0_36] : memref<1x128xf32, #tpu.memory_space<vmem>>, vector<1x128xf32>
    %117 = vector.broadcast %116 : vector<1x128xf32> to vector<16x128xf32>
    %118 = arith.addf %115, %117 : vector<16x128xf32>
    %c0_37 = arith.constant 0 : index
    %c0_38 = arith.constant 0 : index
    %119 = vector.load %arg2[%c0_37, %c0_38] : memref<16x2xf32, #tpu.memory_space<vmem>>, vector<16x2xf32>
    %120 = vector.shape_cast %119 : vector<16x2xf32> to vector<16x2xf32>
    %121 = vector.extract_strided_slice %120 {offsets = [0, 0], sizes = [16, 1], strides = [1, 1]} : vector<16x2xf32> to vector<16x1xf32>
    %122 = vector.broadcast %121 : vector<16x1xf32> to vector<16x128xf32>
    %123 = arith.addf %118, %122 : vector<16x128xf32>
    %cst_39 = arith.constant dense<0xFF800000> : vector<128xf32>
    %124 = vector.multi_reduction <maximumf>, %123, %cst_39 [0] : vector<16x128xf32> to vector<128xf32>
    %125 = vector.shape_cast %124 : vector<128xf32> to vector<1x128xf32>
    %126 = vector.extract_strided_slice %120 {offsets = [0, 1], sizes = [16, 1], strides = [1, 1]} : vector<16x2xf32> to vector<16x1xf32>
    %127 = vector.broadcast %126 : vector<16x1xf32> to vector<16x128xf32>
    %128 = arith.addf %118, %127 : vector<16x128xf32>
    %cst_40 = arith.constant dense<0xFF800000> : vector<128xf32>
    %129 = vector.multi_reduction <maximumf>, %128, %cst_40 [0] : vector<16x128xf32> to vector<128xf32>
    %130 = vector.shape_cast %129 : vector<128xf32> to vector<1x128xf32>
    %131 = tpu.concatenate %125, %130 in 0 : vector<1x128xf32>, vector<1x128xf32> -> vector<2x128xf32>
    %c0_41 = arith.constant 0 : index
    %c0_42 = arith.constant 0 : index
    %132 = vector.load %arg9[%c0_41, %c0_42] : memref<128x4xf32, #tpu.memory_space<vmem>>, vector<128x4xf32>
    %cst_43 = arith.constant dense<0.000000e+00> : vector<2x4xf32>
    %133 = tpu.matmul %131, %132, %cst_43 {dimension_numbers = #tpu.dot_dimension_numbers<[1], [0], [0], [1], [0, 0, 1, 1], [], []>} : vector<2x128xf32>, vector<128x4xf32>, vector<2x4xf32> -> vector<2x4xf32>
    %c0_44 = arith.constant 0 : index
    %c0_45 = arith.constant 0 : index
    %134 = vector.load %arg10[%c0_44, %c0_45] : memref<1x4xf32, #tpu.memory_space<vmem>>, vector<1x4xf32>
    %135 = vector.broadcast %134 : vector<1x4xf32> to vector<2x4xf32>
    %136 = arith.addf %133, %135 : vector<2x4xf32>
    %c0_46 = arith.constant 0 : index
    %c0_47 = arith.constant 0 : index
    %137 = vector.load %arg11[%c0_46, %c0_47] : memref<2x4xf32, #tpu.memory_space<vmem>>, vector<2x4xf32>
    tpu.vector_store %arg11[%c0_46, %c0_47], %136 {strides = array<i32>} : memref<2x4xf32, #tpu.memory_space<vmem>>, vector<2x4xf32>,
    return
  }
}

</mosaic_0001>

<bundles_post_ra>
// kernel: pose_rec_forward.1
= control target key start
LH: loop header
LB: loop body
LE: loop exit
PB: predicated region body
PF: predicated region fallthrough
CT: control target
= control target key end

     0   :  { %vm57_vm0 = vcmask 1043456   ;;  %v1669_v5 = vmov 0   ;;  %vm53_vm1 = vcmask 64512   ;;  %s2089_s0 = inlined_call_operand.vmem [shape: f32[16,8], index: 0, kind: input, shape index: {}]   ;;  %s2090_s1 = inlined_call_operand.vmem [shape: bf16[16,16], index: 1, kind: input, shape index: {}]   ;;  %s2091_s2 = inlined_call_operand.vmem [shape: f32[16,2], index: 2, kind: input, shape index: {}]   ;;  %s2092_s3 = inlined_call_operand.vmem [shape: bf16[8,256], index: 3, kind: input, shape index: {}]   ;;  %s2093_s4 = inlined_call_operand.vmem [shape: bf16[256,8], index: 4, kind: input, shape index: {}]   ;;  %s2094_s5 = inlined_call_operand.vmem [shape: f32[1,256], index: 5, kind: input, shape index: {}]   ;;  %s2095_s6 = inlined_call_operand.vmem [shape: bf16[256,256], index: 6, kind: input, shape index: {}]   ;;  %s2096_s7 = inlined_call_operand.vmem [shape: bf16[256,8], index: 7, kind: input, shape index: {}]   ;;  %s2097_s8 = inlined_call_operand.vmem [shape: f32[1,128], index: 8, kind: input, shape index: {}]   ;;  %s2098_s9 = inlined_call_operand.vmem [shape: f32[128,4], index: 9, kind: input, shape index: {}]   ;;  %s2099_s10 = inlined_call_operand.vmem [shape: f32[1,4], index: 10, kind: input, shape index: {}]   ;;  %s2100_s11 = inlined_call_operand.hbm [shape: f32[2,4], index: 11, kind: output, shape index: {}]  }
   0x1   :  { %v47_v0 = vld [vmem:[%s2092_s3] sm:$0xff]  ;;  %v45_v2 = vld [vmem:[%s2089_s0 + $0x8] sm:$0xff]  ;;  %96 = vmatprep.mubr.bf16.mxu0 %v1669_v5  ;;  %v1537_v12 = vld [vmem:[%s2093_s4 + $0x50] sm:$0xff]  }
   0x2   :  { %v44_v1 = vld [vmem:[%s2089_s0] sm:$0xff]  ;;  %v1284_v3 = vcombine.high %v47_v0, %v47_v0  ;;  %v1283_v4 = vcombine.low %v47_v0, %v47_v0  ;;  %v1535_v10 = vld [vmem:[%s2093_s4 + $0x48] sm:$0xff]   ;;  %v1538_v13 = vld [vmem:[%s2093_s4 + $0x10] sm:$0xff]  }
   0x3   :  { %v1533_v6 = vld [vmem:[%s2093_s4 + $0x40] sm:$0xff]   ;;  %v46_v9 = vpack.c.bf16 %v45_v2, %v44_v1  ;;  %v1536_v11 = vld [vmem:[%s2093_s4 + $0x8] sm:$0xff]   ;;  %v1539_v14 = vld [vmem:[%s2093_s4 + $0x58] sm:$0xff]  }
   0x4   :  { %v1534_v7 = vld [vmem:[%s2093_s4] sm:$0xff]   ;;  %1285 = vmatprep.subr.msk.bf16.mxu0 %vm57_vm0, %v1284_v3  ;;  %v59_v8 = vsel %vm57_vm0, %v1283_v4, 0  ;;  %1361 = vmatprep.subr.bf16.mxu1 %v1533_v6  ;;  %v1540_v15 = vld [vmem:[%s2093_s4 + $0x18] sm:$0xff]   ;;  %v1543_v18 = vld [vmem:[%s2093_s4 + $0x68] sm:$0xff]  }
   0x5   :  { %65 = vmatpush1.bf16.msra.mxu0 %v59_v8  ;;  %1362 = vmatpush3.bf16.msra.mxu1 %v1534_v7  ;;  %v1541_v16 = vld [vmem:[%s2093_s4 + $0x60] sm:$0xff]   ;;  %v1544_v19 = vld [vmem:[%s2093_s4 + $0x28] sm:$0xff]   ;;  %v1545_v20 = vld [vmem:[%s2093_s4 + $0x70] sm:$0xff]  }
   0x6   :  { %1363 = vmatprep.subr.bf16.mxu1 %v1535_v10  ;;  %v1542_v17 = vld [vmem:[%s2093_s4 + $0x20] sm:$0xff]  }
   0x8   :  { %1286 = vmatmul.mubr.msk.bf16.vlgmr.msra.gmra.mrb[0].mxu0 %vm53_vm1, %v46_v9 }
   0x9   :  { %1364 = vmatpush3.bf16.msra.mxu1 %v1536_v11 }
   0xa   :  { %1365 = vmatprep.subr.bf16.mxu1 %v1537_v12 }
   0xd   :  { %1366 = vmatpush3.bf16.msra.mxu1 %v1538_v13 }
   0xe   :  { %1367 = vmatprep.subr.bf16.mxu1 %v1539_v14 }
  0x11   :  { %1368 = vmatpush3.bf16.msra.mxu1 %v1540_v15 }
  0x12   :  { %1369 = vmatprep.subr.bf16.mxu1 %v1541_v16 }
  0x15   :  { %1370 = vmatpush3.bf16.msra.mxu1 %v1542_v17 }
  0x16   :  { %1371 = vmatprep.subr.bf16.mxu1 %v1543_v18 }
  0x19   :  { %1372 = vmatpush3.bf16.msra.mxu1 %v1544_v19 }
  0x1a   :  { %1373 = vmatprep.subr.bf16.mxu1 %v1545_v20 }
  0x1b   :  { %16 = vsyncpa [#allocation3], 0  ;;  %v1546_v21 = vld [vmem:[%s2093_s4 + $0x30] sm:$0xff]   ;;  %v1547_v22 = vld [vmem:[%s2093_s4 + $0x78] sm:$0xff]   ;;  %v1670_v24 = vmov 0.0   ;;  %v1671_v31 = vmov 3   ;;  %v320_v39 = vlaneseq }
  0x1c   :  { %v1548_v23 = vld [vmem:[%s2093_s4 + $0x38] sm:$0xff]   ;;  %1430 = vmatprep.subr.bf16.mxu0 %v1670_v24  ;;  %1523 = vset.pattern.permute.xlu1 %v1671_v31  ;;  %v1672_v32 = vmov 1   ;;  %v1358_v49 = vld [vmem:[%s2090_s1] sm:$0xff]   ;;  %vm332_vm2 = vcmask 130048   ;;  %vm1673_vm3 = vmmov 0   ;;  %vm1172_vm4 = vcmask 1040384  }
  0x1d   :  { %1374 = vmatpush3.bf16.msra.mxu1 %v1546_v21  ;;  %1522 = vset.pattern.permute.xlu0 %v1672_v32  ;;  %v1803_v41 = vshrl.u32 %v320_v39, 7  ;;  %v1815_v55 = vunpack.c.h.bf16 %v1358_v49  ;;  %v1817_v59 = vunpack.c.l.bf16 %v1358_v49  ;;  %s1675_s25 = smov [#allocation2]   ;;  %vm1267_vm5 = vcmask 25600  }
  0x1e   :  { %1375 = vmatprep.subr.bf16.mxu1 %v1547_v22  ;;  %1432 = vmatprep.mubr.msk.bf16.mxu0 %vm1673_vm3, %v1670_v24  ;;  %s1275_s3 = sshll.u32 %s1675_s25, 4  ;;  %s1276_s3 = int_to_ptr.vmem [resolvable:$true] %s1275_s3 }
  0x1f   :  { %v1806_v44 = vsub.s32 0, %v1803_v41  ;;  %v410_v45 = vsub.s32 2, %v1803_v41  ;;  %s1645_s26 = scalar_lea.vmem %s1276_s3, 32  ;;  %p1650_p1 = scmp.lt.s32.totalorder %s1276_s3, %s1276_s3 }
  0x20   :  { %p1646_p0 = scmp.ne.s32.totalorder %s1276_s3, %s1645_s26  ;;  %p1651_p2 = scmp.lt.s32.totalorder %s1645_s26, %s1645_s26 }
  0x21   :  { %1376 = vmatpush3.bf16.msra.mxu1 %v1548_v23 }
  0x22   :  { %p1652_p3 = por %p1651_p2, %p1650_p1 }
  0x24   :  { %p1653_p4 = pnand %p1652_p3, %p1646_p0 }
  0xdb   :  { %v98_v25 = vpop.f32.mrb[0].mxu0 }
  0xdc   :  { %v100_v26 = vpop.f32.mrb[1].mxu0 }
  0xdd   :  { %v102_v27 = vpop.f32.mrb[2].mxu0 }
  0xde   :  { %v107_v28 = vpack.c.bf16 %v102_v27, %v98_v25  ;;  %v104_v29 = vpop.f32.mrb[3].mxu0 }
  0xdf   :  { %v1795_v30 = vpack.c.bf16 %v104_v29, %v100_v26 }
  0xe0   :  { %1431 = vmatpush3.bf16.msra.mxu0 %v107_v28 }
  0xe1   :  { %269 = vmatprep.mubr.bf16.mxu1 %v1795_v30  ;;  %1436 = vmatprep.subr.bf16.mxu0 %v1670_v24 }
  0xe2   :  { %270 = vmatmul.mubr.bf16.vlgmr.msra.gmra.mrb[0].mxu1 %v107_v28 }
 0x1b5   :  { %v1377_v33 = vpop.f32.mrb[0].mxu1 }
 0x1b6   :  { %v1378_v34 = vpop.f32.mrb[1].mxu1 }
 0x1b7   :  { %v1379_v35 = vadd.f32 %v1378_v34, %v1377_v33  ;;  %v1380_v36 = vpop.f32.mrb[2].mxu1 }
 0x1b8   :  { %v1381_v37 = vpop.f32.mrb[3].mxu1 }
 0x1b9   :  { %v1382_v38 = vadd.f32 %v1381_v37, %v1380_v36  ;;  %401 = vperm.xlu1 %1523, %v1379_v35   ;;  %312 = vperm.xlu0 %1522, %v1379_v35  }
 0x1bd   :  { %405 = vperm.xlu1 %1523, %v1382_v38   ;;  %317 = vperm.xlu0 %1522, %v1382_v38  }
 0x1c1   :  { %1524 = vset.pattern.permute.xlu1 %v1672_v32 }
 0x1db   :  { %278 = vxpose.xlu0.b32.start [1/2] (short) (narrow) %v1379_v35, 8 }
 0x1df   :  { %279 = vxpose.xlu0.b32.end [2/2] (short) (narrow) %v1382_v38, 8 }
 0x208   :  { %1525 = vset.pattern.permute.xlu0 %v1671_v31 }
 0x238   :  { %v313_v40 = vpop.permute.xlu0 %312  ;;  %v402_v42 = vpop.permute.xlu1 %401 }
 0x23c   :  { %v318_v43 = vpop.permute.xlu0 %317  ;;  %v406_v50 = vpop.permute.xlu1 %405 }
 0x25b   :  { %v294_v46 = vpop.trf.xlu0 }
 0x25c   :  { %v323_v47 = vrot.slane %v294_v46, %v1806_v44  ;;  %v411_v48 = vrot.slane %v294_v46, %v410_v45  ;;  %v1551_v46 = vld [vmem:[%s2095_s6 + $0x4] ss:$8 sps:$4 sm:$0xff]  }
 0x25e   :  { %v324_v51 = vadd.f32 %v323_v47, %v313_v40  ;;  %v325_v52 = vadd.f32 %v323_v47, %v318_v43  ;;  %v412_v53 = vadd.f32 %v411_v48, %v402_v42  ;;  %v413_v54 = vadd.f32 %v411_v48, %v406_v50 }
 0x260   :  { %v326_v56 = vmul.f32 0.2, %v324_v51  ;;  %v327_v57 = vmul.f32 0.2, %v325_v52  ;;  %v414_v58 = vmul.f32 0.2, %v412_v53 }
 0x261   :  { %v415_v60 = vmul.f32 0.2, %v413_v54 }
 0x262   :  { %v329_v61 = vmax.f32 %v325_v52, %v327_v57  ;;  %v328_v62 = vmax.f32 %v324_v51, %v326_v56  ;;  %v416_v63 = vmax.f32 %v412_v53, %v414_v58  ;;  %v1549_v51 = vld [vmem:[%s2095_s6] ss:$8 sps:$4 sm:$0xff]   ;;  %v1554_v53 = vld [vmem:[%s2095_s6 + $0x14] ss:$8 sps:$4 sm:$0xff]   ;;  %v1558_v58 = vld [vmem:[%s2095_s6 + $0x30] ss:$8 sps:$4 sm:$0xff]  }
 0x263   :  { %v417_v6 = vmax.f32 %v413_v54, %v415_v60  ;;  %v1557_v54 = vld [vmem:[%s2095_s6 + $0x24] ss:$8 sps:$4 sm:$0xff]   ;;  %v1555_v56 = vld [vmem:[%s2095_s6 + $0x20] ss:$8 sps:$4 sm:$0xff]   ;;  %v1560_v57 = vld [vmem:[%s2095_s6 + $0x34] ss:$8 sps:$4 sm:$0xff]  }
 0x264   :  { %v331_v0 = vadd.f32 %v1815_v55, %v329_v61  ;;  %v330_v1 = vadd.f32 %v1817_v59, %v328_v62  ;;  %v418_v4 = vadd.f32 %v1817_v59, %v416_v63  ;;  %v1563_v60 = vld [vmem:[%s2095_s6 + $0x44] ss:$8 sps:$4 sm:$0xff]   ;;  %v1561_v61 = vld [vmem:[%s2095_s6 + $0x40] ss:$8 sps:$4 sm:$0xff]   ;;  %v1566_v62 = vld [vmem:[%s2095_s6 + $0x54] ss:$8 sps:$4 sm:$0xff]  }
 0x265   :  { %v419_v8 = vadd.f32 %v1815_v55, %v417_v6  ;;  %v1564_v63 = vld [vmem:[%s2095_s6 + $0x50] ss:$8 sps:$4 sm:$0xff]   ;;  %v1573_v6 = vld [vmem:[%s2095_s6 + $0x80] ss:$8 sps:$4 sm:$0xff]  }
 0x266   :  { %v336_v2 = vsel %vm332_vm2, %v331_v0, -inf  ;;  %v333_v3 = vsel %vm332_vm2, %v330_v1, -inf  ;;  %v420_v7 = vsel %vm332_vm2, %v418_v4, -inf }
 0x267   :  { %337 = vmax.xlane.f32.xlu0 %v336_v2  ;;  %334 = vmax.xlane.f32.xlu1 %v333_v3  ;;  %v423_v9 = vsel %vm332_vm2, %v419_v8, -inf  ;;  %v1572_v2 = vld [vmem:[%s2095_s6 + $0x74] ss:$8 sps:$4 sm:$0xff]   ;;  %v1570_v3 = vld [vmem:[%s2095_s6 + $0x70] ss:$8 sps:$4 sm:$0xff]  }
 0x26b   :  { %421 = vmax.xlane.f32.xlu1 %v420_v7  ;;  %v1578_v7 = vld [vmem:[%s2095_s6 + $0x94] ss:$8 sps:$4 sm:$0xff]  }
 0x26f   :  { %424 = vmax.xlane.f32.xlu1 %v423_v9  ;;  %v1581_v9 = vld [vmem:[%s2095_s6 + $0xa4] ss:$8 sps:$4 sm:$0xff]  }
 0x2f4   :  { %v338_v10 = vpop.xlane.xlu0 %337  ;;  %v335_v11 = vpop.xlane.xlu1 %334 }
 0x2f5   :  { %v340_v12 = vsub.f32 %v331_v0, %v338_v10  ;;  %v339_v13 = vsub.f32 %v330_v1, %v335_v11  ;;  %v1569_v0 = vld [vmem:[%s2095_s6 + $0x64] ss:$8 sps:$4 sm:$0xff]   ;;  %v1567_v1 = vld [vmem:[%s2095_s6 + $0x60] ss:$8 sps:$4 sm:$0xff]   ;;  %v1584_v11 = vld [vmem:[%s2095_s6 + $0xb4] ss:$8 sps:$4 sm:$0xff]  }
 0x2f6   :  { %v1579_v10 = vld [vmem:[%s2095_s6 + $0xa0] ss:$8 sps:$4 sm:$0xff]  }
 0x2f7   :  { %v341_v14 = vmul.f32 1.442695, %v339_v13  ;;  %v343_v15 = vmul.f32 1.442695, %v340_v12  ;;  %v1582_v12 = vld [vmem:[%s2095_s6 + $0xb0] ss:$8 sps:$4 sm:$0xff]  }
 0x2f8   :  { %v422_v16 = vpop.xlane.xlu1 %421  ;;  %v1587_v13 = vld [vmem:[%s2095_s6 + $0xc4] ss:$8 sps:$4 sm:$0xff]  }
 0x2f9   :  { %v426_v17 = vsub.f32 %v418_v4, %v422_v16  ;;  %1613 = vpow2.f32 %v341_v14  ;;  %v1575_v4 = vld [vmem:[%s2095_s6 + $0x84] ss:$8 sps:$4 sm:$0xff]   ;;  %v1585_v14 = vld [vmem:[%s2095_s6 + $0xc0] ss:$8 sps:$4 sm:$0xff]   ;;  %v1588_v16 = vld [vmem:[%s2095_s6 + $0xd0] ss:$8 sps:$4 sm:$0xff]  }
 0x2fa   :  { %1615 = vpow2.f32 %v343_v15  ;;  %v1590_v15 = vld [vmem:[%s2095_s6 + $0xd4] ss:$8 sps:$4 sm:$0xff]  }
 0x2fb   :  { %v428_v18 = vmul.f32 1.442695, %v426_v17  ;;  %v1593_v17 = vld [vmem:[%s2095_s6 + $0xe4] ss:$8 sps:$4 sm:$0xff]  }
 0x2fc   :  { %v425_v19 = vpop.xlane.xlu1 %424 }
 0x2fd   :  { %v427_v20 = vsub.f32 %v419_v8, %v425_v19  ;;  %1617 = vpow2.f32 %v428_v18  ;;  %v1576_v8 = vld [vmem:[%s2095_s6 + $0x90] ss:$8 sps:$4 sm:$0xff]   ;;  %v1591_v18 = vld [vmem:[%s2095_s6 + $0xe0] ss:$8 sps:$4 sm:$0xff]   ;;  %v1596_v19 = vld [vmem:[%s2095_s6 + $0xf4] ss:$8 sps:$4 sm:$0xff]  }
 0x2ff   :  { %v430_v21 = vmul.f32 1.442695, %v427_v20  ;;  %v1594_v20 = vld [vmem:[%s2095_s6 + $0xf0] ss:$8 sps:$4 sm:$0xff]  }
 0x301   :  { %1619 = vpow2.f32 %v430_v21  ;;  %v1597_v21 = vld [vmem:[%s2096_s7 + $0x40] sm:$0xff]  }
 0x302   :  { %1387 = vmatprep.subr.bf16.mxu1 %v1597_v21 }
 0x303   :  { %v1614_v22 = vpop.eup %1613 }
 0x304   :  { %v345_v23 = vsel %vm332_vm2, %v1614_v22, 0.0  ;;  %v1616_v25 = vpop.eup %1615 }
 0x305   :  { %346 = vadd.xlane.f32.xlu1 %v345_v23  ;;  %v348_v26 = vsel %vm332_vm2, %v1616_v25, 0.0  ;;  %v1599_v23 = vld [vmem:[%s2096_s7 + $0x48] sm:$0xff]  }
 0x307   :  { %v1618_v27 = vpop.eup %1617 }
 0x308   :  { %v432_v28 = vsel %vm332_vm2, %v1618_v27, 0.0 }
 0x309   :  { %349 = vadd.xlane.f32.xlu1 %v348_v26  ;;  %v1601_v26 = vld [vmem:[%s2096_s7 + $0x50] sm:$0xff]  }
 0x30b   :  { %v1620_v29 = vpop.eup %1619 }
 0x30c   :  { %v435_v33 = vsel %vm332_vm2, %v1620_v29, 0.0 }
 0x30d   :  { %433 = vadd.xlane.f32.xlu1 %v432_v28  ;;  %v1603_v28 = vld [vmem:[%s2096_s7 + $0x58] sm:$0xff]  }
 0x311   :  { %436 = vadd.xlane.f32.xlu1 %v435_v33  ;;  %v1605_v33 = vld [vmem:[%s2096_s7 + $0x60] sm:$0xff]  }
 0x392   :  { %v347_v34 = vpop.xlane.xlu1 %346 }
 0x393   :  { %1621 = vrcp.f32 %v347_v34  ;;  %v1606_v34 = vld [vmem:[%s2096_s7 + $0x20] sm:$0xff]  }
 0x396   :  { %v350_v35 = vpop.xlane.xlu1 %349 }
 0x397   :  { %1623 = vrcp.f32 %v350_v35  ;;  %v1607_v35 = vld [vmem:[%s2096_s7 + $0x68] sm:$0xff]  }
 0x39a   :  { %v434_v36 = vpop.xlane.xlu1 %433 }
 0x39b   :  { %1625 = vrcp.f32 %v434_v36  ;;  %v1608_v36 = vld [vmem:[%s2096_s7 + $0x28] sm:$0xff]  }
 0x39d   :  { %v1622_v38 = vpop.eup %1621 }
 0x39e   :  { %v437_v37 = vpop.xlane.xlu1 %436  ;;  %v353_v40 = vmul.f32 %v1622_v38, %v1614_v22  ;;  %v1598_v22 = vld [vmem:[%s2096_s7] sm:$0xff]   ;;  %v1610_v38 = vld [vmem:[%s2096_s7 + $0x30] sm:$0xff]  }
 0x39f   :  { %1627 = vrcp.f32 %v437_v37  ;;  %1388 = vmatpush3.bf16.msra.mxu1 %v1598_v22  ;;  %v1609_v37 = vld [vmem:[%s2096_s7 + $0x70] sm:$0xff]  }
 0x3a0   :  { %1389 = vmatprep.subr.bf16.mxu1 %v1599_v23 }
 0x3a1   :  { %v1624_v39 = vpop.eup %1623 }
 0x3a2   :  { %v354_v42 = vmul.f32 %v1624_v39, %v1616_v25  ;;  %v1600_v25 = vld [vmem:[%s2096_s7 + $0x8] sm:$0xff]   ;;  %v487_v39 = vld [vmem:[%s2094_s5] sm:$0x3] }
 0x3a3   :  { %1390 = vmatpush3.bf16.msra.mxu1 %v1600_v25 }
 0x3a4   :  { %v355_v43 = vpack.c.bf16 %v354_v42, %v353_v40  ;;  %1391 = vmatprep.subr.bf16.mxu1 %v1601_v26  ;;  %v492_v40 = vrot.slane %v487_v39, %v1806_v44 }
 0x3a5   :  { %v1626_v47 = vpop.eup %1625 }
 0x3a6   :  { %1433 = vmatmul.mubr.msk.bf16.vlgmr.msra.gmra.mrb[4].mxu0 %vm332_vm2, %v355_v43  ;;  %v440_v49 = vmul.f32 %v1626_v47, %v1618_v27  ;;  %v1602_v27 = vld [vmem:[%s2096_s7 + $0x10] sm:$0xff]   ;;  %v495_v47 = vsub.s32 1, %v1803_v41 }
 0x3a7   :  { %1437 = vmatpush3.bf16.msra.mxu0 %v1795_v30  ;;  %1438 = vmatprep.mubr.msk.bf16.mxu0 %vm1673_vm3, %v1670_v24  ;;  %v1552_v30 = vld [vmem:[%s2095_s6 + $0x10] ss:$8 sps:$4 sm:$0xff]  }
 0x3a8   :  { %701 = vmatprep.subr.bf16.mxu0 %v1551_v46  ;;  %1392 = vmatpush3.bf16.msra.mxu1 %v1602_v27 }
 0x3a9   :  { %v1628_v48 = vpop.eup %1627  ;;  %1393 = vmatprep.subr.bf16.mxu1 %v1603_v28 }
 0x3aa   :  { %v441_v50 = vmul.f32 %v1628_v48, %v1620_v29  ;;  %v1604_v29 = vld [vmem:[%s2096_s7 + $0x18] sm:$0xff]  }
 0x3ac   :  { %v442_v52 = vpack.c.bf16 %v441_v50, %v440_v49  ;;  %1394 = vmatpush3.bf16.msra.mxu1 %v1604_v29 }
 0x3ad   :  { %1395 = vmatprep.subr.bf16.mxu1 %v1605_v33 }
 0x3ae   :  { %1439 = vmatmul.mubr.msk.bf16.vlgmr.msra.gmra.mrb[8].mxu0 %vm332_vm2, %v442_v52 }
 0x3af   :  { %702 = vmatpush1.bf16.msra.mxu0 %v1549_v51 }
 0x3b0   :  { %703 = vmatprep.subr.bf16.mxu0 %v1554_v53  ;;  %1396 = vmatpush3.bf16.msra.mxu1 %v1606_v34  ;;  %v496_v53 = vrot.slane %v487_v39, %v495_v47 }
 0x3b1   :  { %1397 = vmatprep.subr.bf16.mxu1 %v1607_v35 }
 0x3b3   :  { %704 = vmatpush1.bf16.msra.mxu0 %v1552_v30 }
 0x3b4   :  { %705 = vmatprep.subr.bf16.mxu0 %v1557_v54  ;;  %1398 = vmatpush3.bf16.msra.mxu1 %v1608_v36 }
 0x3b5   :  { %1399 = vmatprep.subr.bf16.mxu1 %v1609_v37 }
 0x3b7   :  { %706 = vmatpush1.bf16.msra.mxu0 %v1555_v56 }
 0x3b8   :  { %707 = vmatprep.subr.bf16.mxu0 %v1560_v57  ;;  %1400 = vmatpush3.bf16.msra.mxu1 %v1610_v38 }
 0x3bb   :  { %708 = vmatpush1.bf16.msra.mxu0 %v1558_v58 }
 0x3bc   :  { %709 = vmatprep.subr.bf16.mxu0 %v1563_v60 }
 0x3bf   :  { %710 = vmatpush1.bf16.msra.mxu0 %v1561_v61 }
 0x3c0   :  { %711 = vmatprep.subr.bf16.mxu0 %v1566_v62 }
 0x3c3   :  { %712 = vmatpush1.bf16.msra.mxu0 %v1564_v63 }
 0x3c4   :  { %713 = vmatprep.subr.bf16.mxu0 %v1569_v0 }
 0x3c7   :  { %714 = vmatpush1.bf16.msra.mxu0 %v1567_v1  ;;  %v1611_v1 = vld [vmem:[%s2096_s7 + $0x78] sm:$0xff]  }
 0x3c8   :  { %715 = vmatprep.subr.bf16.mxu0 %v1572_v2  ;;  %v1612_v2 = vld [vmem:[%s2096_s7 + $0x38] sm:$0xff]   ;;  %1401 = vmatprep.subr.bf16.mxu1 %v1611_v1  ;;  %v1135_v1 = vld [vmem:[%s2091_s2 + $0x8] sm:$0xff] }
 0x3c9   :  { %1402 = vmatpush3.bf16.msra.mxu1 %v1612_v2  ;;  %v1674_v2 = vmov 0.0|0.0  }
 0x3ca   :  { %1448 = vmatprep.subr.bf16.mxu1 %v1670_v24 }
 0x3cb   :  { %716 = vmatpush1.bf16.msra.mxu0 %v1570_v3 }
 0x3cc   :  { %717 = vmatprep.subr.bf16.mxu0 %v1575_v4 }
 0x3cf   :  { %718 = vmatpush1.bf16.msra.mxu0 %v1573_v6 }
 0x3d0   :  { %719 = vmatprep.subr.bf16.mxu0 %v1578_v7 }
 0x3d3   :  { %720 = vmatpush1.bf16.msra.mxu0 %v1576_v8 }
 0x3d4   :  { %721 = vmatprep.subr.bf16.mxu0 %v1581_v9 }
 0x3d7   :  { %722 = vmatpush1.bf16.msra.mxu0 %v1579_v10 }
 0x3d8   :  { %723 = vmatprep.subr.bf16.mxu0 %v1584_v11 }
 0x3db   :  { %724 = vmatpush1.bf16.msra.mxu0 %v1582_v12 }
 0x3dc   :  { %725 = vmatprep.subr.bf16.mxu0 %v1587_v13 }
 0x3df   :  { %726 = vmatpush1.bf16.msra.mxu0 %v1585_v14 }
 0x3e0   :  { %727 = vmatprep.subr.bf16.mxu0 %v1590_v15 }
 0x3e3   :  { %728 = vmatpush1.bf16.msra.mxu0 %v1588_v16 }
 0x3e4   :  { %729 = vmatprep.subr.bf16.mxu0 %v1593_v17 }
 0x3e7   :  { %730 = vmatpush1.bf16.msra.mxu0 %v1591_v18 }
 0x3e8   :  { %731 = vmatprep.subr.bf16.mxu0 %v1596_v19 }
 0x3eb   :  { %732 = vmatpush1.bf16.msra.mxu0 %v1594_v20 }
 0x3ec   :  { %1442 = vmatprep.subr.bf16.mxu0 %v1670_v24 }
 0x479   :  { %v393_v42 = vpop.f32.mrb[4].mxu0 }
 0x47a   :  { %v499_v43 = vadd.f32 %v492_v40, %v393_v42  ;;  %v1434_v46 = vpop.f32.mrb[5].mxu0 }
 0x47b   :  { %v396_v48 = vpop.f32.mrb[6].mxu0 }
 0x47c   :  { %v501_v49 = vadd.f32 %v492_v40, %v396_v48  ;;  %v1435_v50 = vpop.f32.mrb[7].mxu0  ;;  %v503_v51 = vmax.f32 %v499_v43, 0.0 }
 0x47e   :  { %v505_v52 = vmax.f32 %v501_v49, 0.0 }
 0x480   :  { %v507_v30 = vpack.c.bf16 %v505_v52, %v503_v51 }
 0x481   :  { %v480_v54 = vpop.f32.mrb[8].mxu0 }
 0x482   :  { %v500_v56 = vadd.f32 %v496_v53, %v480_v54  ;;  %v1440_v57 = vpop.f32.mrb[9].mxu0 }
 0x483   :  { %v483_v58 = vpop.f32.mrb[10].mxu0 }
 0x484   :  { %v502_v60 = vadd.f32 %v496_v53, %v483_v58  ;;  %v1441_v61 = vpop.f32.mrb[11].mxu0  ;;  %v504_v62 = vmax.f32 %v500_v56, 0.0 }
 0x486   :  { %v506_v63 = vmax.f32 %v502_v60, 0.0 }
 0x488   :  { %v508_v0 = vpack.c.bf16 %v506_v63, %v504_v62 }
 0x48a   :  { %733 = vmatprep.mubr.bf16.mxu0 %v508_v0  ;;  %v1134_v0 = vld [vmem:[%s2091_s2] sm:$0xff] }
 0x48b   :  { %734 = vmatmul.mubr.bf16.vlgmr.msra.gmra.mrb[12].mxu0 %v507_v30 }
 0x48c   :  { %1444 = vmatprep.mubr.msk.bf16.mxu0 %vm1673_vm3, %v1670_v24 }
 0x55e   :  { %v735_v3 = vpop.f32.mrb[12].mxu0 }
 0x55f   :  { %v737_v4 = vpop.f32.mrb[13].mxu0 }
 0x560   :  { %v739_v6 = vpop.f32.mrb[14].mxu0 }
 0x561   :  { %v744_v7 = vpack.c.bf16 %v739_v6, %v735_v3  ;;  %v741_v8 = vpop.f32.mrb[15].mxu0 }
 0x562   :  { %v745_v9 = vpack.c.bf16 %v741_v8, %v737_v4 }
 0x564   :  { %906 = vmatprep.mubr.bf16.mxu1 %v745_v9  ;;  %1443 = vmatpush3.bf16.msra.mxu0 %v745_v9  ;;  %v1174_v9 = vld [vmem:[%s2098_s9] sm:$0xff] }
 0x565   :  { %907 = vmatmul.mubr.bf16.vlgmr.msra.gmra.mrb[4].mxu1 %v744_v7 }
 0x566   :  { %1449 = vmatpush3.bf16.msra.mxu1 %v744_v7  ;;  %1450 = vmatprep.mubr.msk.bf16.mxu1 %vm1673_vm3, %v1670_v24 }
 0x567   :  { %1489 = vmatprep.subr.bf16.mxu1 %v1674_v2 }
 0x638   :  { %v1403_v10 = vpop.f32.mrb[4].mxu1 }
 0x639   :  { %v1404_v11 = vpop.f32.mrb[5].mxu1 }
 0x63a   :  { %v1405_v12 = vadd.f32 %v1404_v11, %v1403_v10  ;;  %v1406_v13 = vpop.f32.mrb[6].mxu1  ;;  %v1175_v10 = vld [vmem:[%s2098_s9 + $0x8] sm:$0xff] }
 0x63b   :  { %v1407_v14 = vpop.f32.mrb[7].mxu1 }
 0x63c   :  { %v1408_v15 = vadd.f32 %v1407_v14, %v1406_v13  ;;  %993 = vperm.xlu0 %1525, %v1405_v12   ;;  %949 = vperm.xlu1 %1524, %v1405_v12   ;;  %v1490_v14 = vpack.c.bf16 %v1175_v10, %v1174_v9 }
 0x640   :  { %954 = vperm.xlu1 %1524, %v1408_v15   ;;  %1528 = vset.pattern.permute.xlu0 %v1669_v5 }
 0x644   :  { %1526 = vset.pattern.permute.xlu1 %v1671_v31 }
 0x645   :  { %997 = vperm.xlu1 %1526, %v1408_v15  }
 0x66e   :  { %915 = vxpose.xlu1.b32.start [1/2] (short) (narrow) %v1405_v12, 8 }
 0x672   :  { %916 = vxpose.xlu1.b32.end [2/2] (short) (narrow) %v1408_v15, 8 }
 0x690   :  { %1527 = vset.pattern.permute.xlu1 %v1669_v5 }
 0x6bb   :  { %v950_v16 = vpop.permute.xlu1 %949  ;;  %v994_v22 = vpop.permute.xlu0 %993 }
 0x6bf   :  { %v955_v17 = vpop.permute.xlu1 %954 }
 0x6c4   :  { %v998_v18 = vpop.permute.xlu1 %997 }
 0x6ee   :  { %v931_v19 = vpop.trf.xlu1 }
 0x6ef   :  { %v960_v20 = vrot.slane %v931_v19, %v1806_v44  ;;  %v1003_v21 = vrot.slane %v931_v19, %v410_v45 }
 0x6f1   :  { %v961_v23 = vadd.f32 %v960_v20, %v950_v16  ;;  %v962_v25 = vadd.f32 %v960_v20, %v955_v17  ;;  %v1004_v26 = vadd.f32 %v1003_v21, %v994_v22  ;;  %v1005_v27 = vadd.f32 %v1003_v21, %v998_v18  ;;  %v1176_v20 = vld [vmem:[%s2098_s9 + $0x10] sm:$0xff]  ;;  %v1177_v21 = vld [vmem:[%s2098_s9 + $0x18] sm:$0xff] }
 0x6f2   :  { %v1493_v22 = vpack.c.bf16 %v1177_v21, %v1176_v20 }
 0x6f3   :  { %v963_v31 = vmul.f32 0.2, %v961_v23  ;;  %v964_v28 = vmul.f32 0.2, %v962_v25  ;;  %v1006_v29 = vmul.f32 0.2, %v1004_v26 }
 0x6f4   :  { %v1007_v33 = vmul.f32 0.2, %v1005_v27 }
 0x6f5   :  { %v966_v34 = vmax.f32 %v962_v25, %v964_v28  ;;  %v965_v5 = vmax.f32 %v961_v23, %v963_v31  ;;  %v1008_v35 = vmax.f32 %v1004_v26, %v1006_v29  ;;  %v1178_v23 = vld [vmem:[%s2098_s9 + $0x20] sm:$0xff]  ;;  %v1180_v26 = vld [vmem:[%s2098_s9 + $0x30] sm:$0xff]  ;;  %v1183_v29 = vld [vmem:[%s2098_s9 + $0x48] sm:$0xff] }
 0x6f6   :  { %v1009_v38 = vmax.f32 %v1005_v27, %v1007_v33  ;;  %v1181_v27 = vld [vmem:[%s2098_s9 + $0x38] sm:$0xff]  ;;  %v1182_v28 = vld [vmem:[%s2098_s9 + $0x40] sm:$0xff] }
 0x6f7   :  { %v968_v36 = vadd.f32 %v1815_v55, %v966_v34  ;;  %v967_v37 = vadd.f32 %v1817_v59, %v965_v5  ;;  %v1010_v45 = vadd.f32 %v1817_v59, %v1008_v35  ;;  %v1499_v31 = vpack.c.bf16 %v1181_v27, %v1180_v26  ;;  %v1184_v34 = vld [vmem:[%s2098_s9 + $0x50] sm:$0xff]  ;;  %v1185_v5 = vld [vmem:[%s2098_s9 + $0x58] sm:$0xff] }
 0x6f8   :  { %v1011_v40 = vadd.f32 %v1815_v55, %v1009_v38  ;;  %v1502_v33 = vpack.c.bf16 %v1183_v29, %v1182_v28  ;;  %v1505_v35 = vpack.c.bf16 %v1185_v5, %v1184_v34 }
 0x6f9   :  { %v972_v44 = vsel %vm332_vm2, %v968_v36, -inf  ;;  %v969_v41 = vsel %vm332_vm2, %v967_v37, -inf  ;;  %v1012_v39 = vsel %vm332_vm2, %v1010_v45, -inf }
 0x6fa   :  { %973 = vmax.xlane.f32.xlu1 %v972_v44  ;;  %970 = vmax.xlane.f32.xlu0 %v969_v41  ;;  %v1015_v42 = vsel %vm332_vm2, %v1011_v40, -inf  ;;  %v1188_v41 = vld [vmem:[%s2098_s9 + $0x70] sm:$0xff] }
 0x6fe   :  { %1013 = vmax.xlane.f32.xlu0 %v1012_v39 }
 0x702   :  { %1016 = vmax.xlane.f32.xlu0 %v1015_v42 }
 0x787   :  { %v974_v43 = vpop.xlane.xlu1 %973  ;;  %v971_v46 = vpop.xlane.xlu0 %970 }
 0x788   :  { %v976_v47 = vsub.f32 %v968_v36, %v974_v43  ;;  %v975_v48 = vsub.f32 %v967_v37, %v971_v46  ;;  %v1186_v36 = vld [vmem:[%s2098_s9 + $0x60] sm:$0xff]  ;;  %v1187_v37 = vld [vmem:[%s2098_s9 + $0x68] sm:$0xff] }
 0x789   :  { %v1508_v44 = vpack.c.bf16 %v1187_v37, %v1186_v36 }
 0x78a   :  { %v977_v49 = vmul.f32 1.442695, %v975_v48  ;;  %v979_v50 = vmul.f32 1.442695, %v976_v47 }
 0x78b   :  { %v1014_v51 = vpop.xlane.xlu0 %1013 }
 0x78c   :  { %v1018_v52 = vsub.f32 %v1010_v45, %v1014_v51  ;;  %1629 = vpow2.f32 %v977_v49  ;;  %v1189_v45 = vld [vmem:[%s2098_s9 + $0x78] sm:$0xff]  ;;  %v1355_v51 = vld [vmem:[%s2097_s8] ss:$0 sm:$0xff] }
 0x78d   :  { %1631 = vpow2.f32 %v979_v50  ;;  %v1511_v38 = vpack.c.bf16 %v1189_v45, %v1188_v41 }
 0x78e   :  { %v1020_v59 = vmul.f32 1.442695, %v1018_v52 }
 0x78f   :  { %v1017_v53 = vpop.xlane.xlu0 %1016 }
 0x790   :  { %1633 = vpow2.f32 %v1020_v59  ;;  %v1019_v30 = vsub.f32 %v1011_v40, %v1017_v53 }
 0x792   :  { %v1022_v54 = vmul.f32 1.442695, %v1019_v30 }
 0x794   :  { %1635 = vpow2.f32 %v1022_v54 }
 0x796   :  { %v1630_v55 = vpop.eup %1629 }
 0x797   :  { %v981_v56 = vsel %vm332_vm2, %v1630_v55, 0.0  ;;  %v1632_v57 = vpop.eup %1631 }
 0x798   :  { %982 = vadd.xlane.f32.xlu0 %v981_v56  ;;  %v984_v61 = vsel %vm332_vm2, %v1632_v57, 0.0 }
 0x79a   :  { %v1634_v58 = vpop.eup %1633 }
 0x79b   :  { %v1024_v60 = vsel %vm332_vm2, %v1634_v58, 0.0 }
 0x79c   :  { %1025 = vadd.xlane.f32.xlu1 %v1024_v60  ;;  %985 = vadd.xlane.f32.xlu0 %v984_v61 }
 0x79e   :  { %v1636_v62 = vpop.eup %1635 }
 0x79f   :  { %v1027_v63 = vsel %vm332_vm2, %v1636_v62, 0.0 }
 0x7a0   :  { %1028 = vadd.xlane.f32.xlu0 %v1027_v63 }
 0x7ad   :  { %1138 = vperm.xlu1 %1527, %v1134_v0  }
 0x7b1   :  { %1529 = vset.pattern.permute.xlu1 %v1672_v32 }
 0x7b2   :  { %1156 = vperm.xlu1 %1529, %v1134_v0  }
 0x7b6   :  { %1143 = vperm.xlu0 %1528, %v1135_v1   ;;  %1160 = vperm.xlu1 %1529, %v1135_v1  }
 0x7ba   :  { %1530 = vset.pattern.permute.xlu0 %v1672_v32 }
 0x825   :  { %v983_v3 = vpop.xlane.xlu0 %982 }
 0x826   :  { %1637 = vrcp.f32 %v983_v3 }
 0x829   :  { %v1026_v4 = vpop.xlane.xlu1 %1025  ;;  %v986_v6 = vpop.xlane.xlu0 %985 }
 0x82a   :  { %1639 = vrcp.f32 %v986_v6 }
 0x82b   :  { %1641 = vrcp.f32 %v1026_v4 }
 0x82d   :  { %v1029_v7 = vpop.xlane.xlu0 %1028  ;;  %v1139_v39 = vpop.permute.xlu1 %1138 }
 0x82e   :  { %1643 = vrcp.f32 %v1029_v7 }
 0x830   :  { %v1638_v8 = vpop.eup %1637 }
 0x831   :  { %v989_v11 = vmul.f32 %v1638_v8, %v1630_v55  ;;  %v1157_v50 = vpop.permute.xlu1 %1156 }
 0x834   :  { %v1640_v32 = vpop.eup %1639 }
 0x835   :  { %v990_v12 = vmul.f32 %v1640_v32, %v1632_v57  ;;  %v1642_v13 = vpop.eup %1641  ;;  %v1144_v56 = vpop.permute.xlu0 %1143 }
 0x836   :  { %v1032_v17 = vmul.f32 %v1642_v13, %v1634_v58  ;;  %v1161_v58 = vpop.permute.xlu1 %1160 }
 0x837   :  { %v991_v15 = vpack.c.bf16 %v990_v12, %v989_v11 }
 0x838   :  { %v1644_v16 = vpop.eup %1643 }
 0x839   :  { %v1033_v18 = vmul.f32 %v1644_v16, %v1636_v62  ;;  %1451 = vmatmul.mubr.msk.bf16.vlgmr.msra.gmra.mrb[8].mxu1 %vm332_vm2, %v991_v15  ;;  %v1356_v15 = vld [vmem:[%s2099_s10] ss:$0 sm:$0xff] }
 0x83a   :  { %1491 = vmatpush3.bf16.msra.mxu1 %v1490_v14  ;;  %1486 = vmatprep.mubr.msk.f32.mxu1 %vm1673_vm3, %v1670_v24  ;;  %v1179_v24 = vld [vmem:[%s2098_s9 + $0x28] sm:$0xff] }
 0x83b   :  { %v1034_v19 = vpack.c.bf16 %v1033_v18, %v1032_v17  ;;  %1492 = vmatprep.subr.bf16.mxu1 %v1674_v2  ;;  %v1496_v25 = vpack.c.bf16 %v1179_v24, %v1178_v23 }
 0x83d   :  { %1445 = vmatmul.mubr.msk.bf16.vlgmr.msra.gmra.mrb[16].mxu0 %vm332_vm2, %v1034_v19 }
 0x83e   :  { %1494 = vmatpush3.bf16.msra.mxu1 %v1493_v22 }
 0x83f   :  { %1495 = vmatprep.subr.bf16.mxu1 %v1674_v2 }
 0x842   :  { %1497 = vmatpush3.bf16.msra.mxu1 %v1496_v25 }
 0x843   :  { %1498 = vmatprep.subr.bf16.mxu1 %v1674_v2 }
 0x846   :  { %1500 = vmatpush3.bf16.msra.mxu1 %v1499_v31 }
 0x847   :  { %1501 = vmatprep.subr.bf16.mxu1 %v1674_v2 }
 0x84a   :  { %1503 = vmatpush3.bf16.msra.mxu1 %v1502_v33 }
 0x84b   :  { %1504 = vmatprep.subr.bf16.mxu1 %v1674_v2 }
 0x84e   :  { %1506 = vmatpush3.bf16.msra.mxu1 %v1505_v35 }
 0x84f   :  { %1507 = vmatprep.subr.bf16.mxu1 %v1674_v2 }
 0x852   :  { %1509 = vmatpush3.bf16.msra.mxu1 %v1508_v44 }
 0x853   :  { %1510 = vmatprep.subr.bf16.mxu1 %v1674_v2 }
 0x856   :  { %1512 = vmatpush3.bf16.msra.mxu1 %v1511_v38 }
 0x90c   :  { %v1116_v40 = vpop.f32.mrb[8].mxu1 }
 0x90d   :  { %v1452_v42 = vpop.f32.mrb[9].mxu1 }
 0x90e   :  { %v1119_v43 = vpop.f32.mrb[10].mxu1 }
 0x90f   :  { %v1453_v46 = vpop.f32.mrb[11].mxu1 }
 0x910   :  { %v1072_v47 = vpop.f32.mrb[16].mxu0 }
 0x911   :  { %v1117_v48 = vadd.f32 %v1116_v40, %v1072_v47  ;;  %v1446_v49 = vpop.f32.mrb[17].mxu0 }
 0x912   :  { %v1075_v52 = vpop.f32.mrb[18].mxu0 }
 0x913   :  { %v1123_v59 = vmul.f32 0.5, %v1117_v48  ;;  %v1120_v53 = vadd.f32 %v1119_v43, %v1075_v52  ;;  %v1447_v30 = vpop.f32.mrb[19].mxu0 }
 0x915   :  { %v1132_v54 = vadd.f32 %v1355_v51, %v1123_v59  ;;  %v1124_v55 = vmul.f32 0.5, %v1120_v53 }
 0x917   :  { %v1133_v57 = vadd.f32 %v1355_v51, %v1124_v55  ;;  %v1163_v60 = vadd.f32 %v1157_v50, %v1132_v54  ;;  %v1146_v62 = vadd.f32 %v1139_v39, %v1132_v54 }
 0x919   :  { %v1164_v61 = vadd.f32 %v1161_v58, %v1133_v57  ;;  %v1147_v63 = vadd.f32 %v1144_v56, %v1133_v57 }
 0x91b   :  { %v1165_v0 = vmax.f32 %v1163_v60, %v1164_v61  ;;  %v1148_v1 = vmax.f32 %v1146_v62, %v1147_v63 }
 0x91d   :  { %v1166_v2 = vrot.slane %v1165_v0, 4  ;;  %v1149_v3 = vrot.slane %v1148_v1, 4 }
 0x91f   :  { %v1167_v4 = vmax.f32 %v1165_v0, %v1166_v2  ;;  %v1150_v6 = vmax.f32 %v1148_v1, %v1149_v3 }
 0x921   :  { %v1168_v7 = vrot.slane %v1167_v4, 2  ;;  %v1151_v8 = vrot.slane %v1150_v6, 2 }
 0x923   :  { %v1169_v9 = vmax.f32 %v1167_v4, %v1168_v7  ;;  %v1152_v10 = vmax.f32 %v1150_v6, %v1151_v8 }
 0x925   :  { %v1170_v32 = vrot.slane %v1169_v9, 1  ;;  %v1153_v11 = vrot.slane %v1152_v10, 1 }
 0x927   :  { %v1154_v12 = vmax.f32 %v1152_v10, %v1153_v11  ;;  %v1171_v13 = vmax.f32 %v1169_v9, %v1170_v32 }
 0x929   :  { %v1173_v14 = vsel %vm1172_vm4, %v1154_v12, %v1171_v13 }
 0x92a   :  { %1487 = vmatmul.mubr.f32.vlgmr.msra.gmra.mrb[12].mxu1 %v1173_v14 }
 0x9fd   :  { %v1263_v16 = vpop.f32.mrb[12].mxu1 }
 0x9fe   :  { %v1264_v17 = vadd.f32 %v1356_v15, %v1263_v16  ;;  %v1488_v18 = vpop.f32.mrb[13].mxu1 }
 0xa00   :  { %1268 = vst.msk [vmem:[#allocation2] sm:$0x3] %vm1267_vm5, %v1264_v17 }
 0xa01   :  { %1656 = shalt.err (!%p1653_p4)
}
 0xa02   :  { %s1657_s28 = scalar_lea.hbm %s2100_s11, 32 }
 0xa03   :  { %p1658_p5 = scmp.ne.s32.totalorder %s2100_s11, %s1657_s28  ;;  %p1661_p6 = scmp.lt.u32.totalorder %s1657_s28, %s2100_s11 }
 0xa05   :  { %p1663_p7 = pnand %p1661_p6, %p1658_p5 }
 0xa07   :  { %1666 = shalt.err (!%p1663_p7)
}
 0xa08   :  { %1278 = dma.vmem_to_hbm [thread:$0]  %s1276_s3, 32, %s2100_s11, [#allocation3]  }
 0xa09   :  { %1667 = dma.done.wait [#allocation3], 32  }
 0xa0a   :  { %1668 = vsyncadd [#allocation3], 4294967264 }
 0xa0b   :  { %1282 = vsyncpa [#allocation3], 1 }

</bundles_post_ra>
